<compile_context>
chip_gen: v7x
topology: tpu7x:2x2x1
jax: 0.10.0
libtpu: 0.0.40
codegen_flags: <defaults>
</compile_context>

<pallas_src>
import jax
import jax.numpy as jnp
from jax import lax
from jax.experimental import pallas as pl
from jax.experimental.pallas import tpu as pltpu

# TODO(synk): raw-string tokenization / vocab lookup (t2v_bow.encoding on text)
# has no Pallas equivalent; token ids are produced host-side and fed as int32.


def bow_kernel(tok_ref, out_ref):
    """Bag-of-words counting for one (batch-tile, vocab-tile) block.

    tok_ref : (Bt, T) int32 token ids for this batch tile (pad sentinel -1).
    out_ref : (Bt, Vt) float32 counts for vocab slice [j*Vt, (j+1)*Vt).
    """
    tok = tok_ref[...]                               # (Bt, T) int32
    Bt, T = tok.shape
    Vt = out_ref.shape[1]
    v_off = pl.program_id(1) * Vt

    # Vocab ids covered by this tile, on the lane axis.  They are always >= 0,
    # so the -1 pad sentinel can never match -> no explicit validity mask.
    vocab = lax.broadcasted_iota(jnp.int32, (1, Vt), 1) + v_off   # (1, Vt)

    acc0 = jnp.zeros((Bt, Vt), jnp.int32)

    if T <= 64:
        # Short captions: static unrolled loop, static lane slices.
        acc = acc0
        for t in range(T):
            hit = tok[:, t:t + 1] == vocab                        # (Bt, Vt)
            acc = acc + hit.astype(jnp.int32)
    else:
        # Long captions: bounded-live-range loop with modest unroll.
        def body(t, acc):
            ids = lax.dynamic_slice_in_dim(tok, t, 1, axis=1)     # (Bt, 1)
            return acc + (ids == vocab).astype(jnp.int32)

        acc = lax.fori_loop(0, T, body, acc0, unroll=8)

    out_ref[...] = acc.astype(out_ref.dtype)


def _round_up(x: int, m: int) -> int:
    return (x + m - 1) // m * m


def _vmem_limit_bytes() -> int:
    """Generation-aware scoped-VMEM limit (leaves headroom under physical)."""
    try:
        cap = int(pltpu.get_tpu_info().vmem_capacity_bytes)
    except Exception:
        cap = 64 << 20                      # conservative: v7x per-TC physical
    return min(cap * 3 // 4, 96 << 20)      # 48 MiB on v7x, 96 MiB on v5e/v6e


def bow_encode(tokens: jax.Array, vocab_size: int, *,
               bt: int | None = None, vt: int | None = None) -> jax.Array:
    """(B, T) int32 token ids (pad=-1) -> (B, vocab_size) float32 BoW counts."""
    B, T = tokens.shape
    Vp = _round_up(vocab_size, 128)          # lane-pad vocab; sliced off below
    vmem_limit = _vmem_limit_bytes()

    # Batch tile: multiple of 8 sublanes, up to 128 rows.
    if bt is None:
        bt = min(128, _round_up(B, 8))
    assert bt % 8 == 0, "batch tile must be a multiple of 8 sublanes"

    # Vocab tile: widest multiple of 128 that divides Vp, capped at 2048 and
    # bounded so ~(2 out bufs + acc + intermediate) * bt * vt * 4B fits in
    # half the scoped-VMEM budget.  No vt-halving "megacore" heuristic: the
    # parallel batch axis is preferred for splitting across v7x's two cores.
    if vt is None:
        budget = vmem_limit // 2
        vt_cap = max(128, min(2048, budget // (16 * bt) // 128 * 128))
        d = vt_cap // 128
        nlanes = Vp // 128
        while d > 1 and nlanes % d != 0:
            d -= 1
        vt = d * 128
    assert vt % 128 == 0 and Vp % vt == 0

    # Pad batch to a multiple of bt with the -1 sentinel (never matches).
    Bp = _round_up(B, bt)
    tok_p = jnp.pad(tokens.astype(jnp.int32), ((0, Bp - B), (0, 0)),
                    constant_values=-1)

    grid = (Bp // bt, Vp // vt)              # (batch tiles, vocab tiles)

    out = pl.pallas_call(
        bow_kernel,
        out_shape=jax.ShapeDtypeStruct((Bp, Vp), jnp.float32),
        grid=grid,
        # tokens: one (bt, T) batch tile; index_map ignores j, so the tile
        # stays resident across the inner vocab axis (no redundant DMAs).
        in_specs=[pl.BlockSpec((bt, T), lambda b, j: (b, 0))],
        # output: lane-dense (bt, vt) tile.
        out_specs=pl.BlockSpec((bt, vt), lambda b, j: (b, j)),
        compiler_params=pltpu.CompilerParams(
            dimension_semantics=("parallel", "parallel"),
            vmem_limit_bytes=vmem_limit),
        cost_estimate=pl.CostEstimate(
            flops=2 * Bp * T * Vp,
            transcendentals=0,
            bytes_accessed=4 * Bp * Vp + 4 * Bp * T),
    )(tok_p)

    # Drop padded batch rows and padded vocab columns.
    return out[:B, :vocab_size]


def bow_reference(tokens: jax.Array, vocab_size: int) -> jax.Array:
    """Pure-JAX reference for correctness checking."""
    valid = tokens >= 0
    one_hot = jax.nn.one_hot(tokens, vocab_size, dtype=jnp.float32)
    one_hot = one_hot * valid[..., None].astype(jnp.float32)
    return one_hot.sum(axis=1)


if __name__ == "__main__":
    key = jax.random.PRNGKey(0)
    B, T, V = 4, 8, 512          # batch of 4 captions, max 8 tokens, vocab 512

    # Deterministic "tokenized captions": ids in [-1, V), -1 acts as padding.
    tokens = jax.random.randint(key, (B, T), minval=-1, maxval=V,
                                dtype=jnp.int32)

    bow_out = bow_encode(tokens, V)
    bow_out = jax.block_until_ready(bow_out)

    ref = bow_reference(tokens, V)
    assert bow_out.shape == (B, V)
    assert bow_out.dtype == jnp.float32
    assert jnp.allclose(bow_out, ref), "Pallas BoW mismatch vs reference"

    print("KERNEL_OK")
</pallas_src>

<mosaic_0001>
module attributes {stable_mosaic.version = 11 : i64} {
  func.func @bow_kernel(%arg0: i32, %arg1: i32, %arg2: memref<8x8xi32, #tpu.memory_space<vmem>>, %arg3: memref<8x512xf32, #tpu.memory_space<vmem>>) attributes {dimension_semantics = [#tpu.dimension_semantics<parallel>, #tpu.dimension_semantics<parallel>], iteration_bounds = array<i64: 1, 1>, scalar_prefetch = 0 : i64, scratch_operands = 0 : i64, tpu.core_type = #tpu.core_type<tc>, window_params = [{transform_indices = @transform_0, window_bounds = array<i64: 8, 8>}, {transform_indices = @transform_1, window_bounds = array<i64: 8, 512>}]} {
    %c0 = arith.constant 0 : index
    %c0_0 = arith.constant 0 : index
    %0 = vector.load %arg2[%c0, %c0_0] : memref<8x8xi32, #tpu.memory_space<vmem>>, vector<8x8xi32>
    %c512_i32 = arith.constant 512 : i32
    %1 = arith.muli %arg1, %c512_i32 : i32
    %2 = tpu.iota {dimensions = array<i32: 1>} : vector<1x512xi32>
    %3 = vector.broadcast %1 : i32 to vector<1x512xi32>
    %4 = arith.addi %2, %3 : vector<1x512xi32>
    %c0_i32 = arith.constant 0 : i32
    %5 = vector.broadcast %c0_i32 : i32 to vector<8x512xi32>
    %6 = vector.extract_strided_slice %0 {offsets = [0, 0], sizes = [8, 1], strides = [1, 1]} : vector<8x8xi32> to vector<8x1xi32>
    %7 = vector.broadcast %6 : vector<8x1xi32> to vector<8x512xi32>
    %8 = vector.broadcast %4 : vector<1x512xi32> to vector<8x512xi32>
    %9 = arith.cmpi eq, %7, %8 : vector<8x512xi32>
    %10 = arith.extui %9 : vector<8x512xi1> to vector<8x512xi32>
    %11 = arith.addi %5, %10 : vector<8x512xi32>
    %12 = vector.extract_strided_slice %0 {offsets = [0, 1], sizes = [8, 1], strides = [1, 1]} : vector<8x8xi32> to vector<8x1xi32>
    %13 = vector.broadcast %12 : vector<8x1xi32> to vector<8x512xi32>
    %14 = vector.broadcast %4 : vector<1x512xi32> to vector<8x512xi32>
    %15 = arith.cmpi eq, %13, %14 : vector<8x512xi32>
    %16 = arith.extui %15 : vector<8x512xi1> to vector<8x512xi32>
    %17 = arith.addi %11, %16 : vector<8x512xi32>
    %18 = vector.extract_strided_slice %0 {offsets = [0, 2], sizes = [8, 1], strides = [1, 1]} : vector<8x8xi32> to vector<8x1xi32>
    %19 = vector.broadcast %18 : vector<8x1xi32> to vector<8x512xi32>
    %20 = vector.broadcast %4 : vector<1x512xi32> to vector<8x512xi32>
    %21 = arith.cmpi eq, %19, %20 : vector<8x512xi32>
    %22 = arith.extui %21 : vector<8x512xi1> to vector<8x512xi32>
    %23 = arith.addi %17, %22 : vector<8x512xi32>
    %24 = vector.extract_strided_slice %0 {offsets = [0, 3], sizes = [8, 1], strides = [1, 1]} : vector<8x8xi32> to vector<8x1xi32>
    %25 = vector.broadcast %24 : vector<8x1xi32> to vector<8x512xi32>
    %26 = vector.broadcast %4 : vector<1x512xi32> to vector<8x512xi32>
    %27 = arith.cmpi eq, %25, %26 : vector<8x512xi32>
    %28 = arith.extui %27 : vector<8x512xi1> to vector<8x512xi32>
    %29 = arith.addi %23, %28 : vector<8x512xi32>
    %30 = vector.extract_strided_slice %0 {offsets = [0, 4], sizes = [8, 1], strides = [1, 1]} : vector<8x8xi32> to vector<8x1xi32>
    %31 = vector.broadcast %30 : vector<8x1xi32> to vector<8x512xi32>
    %32 = vector.broadcast %4 : vector<1x512xi32> to vector<8x512xi32>
    %33 = arith.cmpi eq, %31, %32 : vector<8x512xi32>
    %34 = arith.extui %33 : vector<8x512xi1> to vector<8x512xi32>
    %35 = arith.addi %29, %34 : vector<8x512xi32>
    %36 = vector.extract_strided_slice %0 {offsets = [0, 5], sizes = [8, 1], strides = [1, 1]} : vector<8x8xi32> to vector<8x1xi32>
    %37 = vector.broadcast %36 : vector<8x1xi32> to vector<8x512xi32>
    %38 = vector.broadcast %4 : vector<1x512xi32> to vector<8x512xi32>
    %39 = arith.cmpi eq, %37, %38 : vector<8x512xi32>
    %40 = arith.extui %39 : vector<8x512xi1> to vector<8x512xi32>
    %41 = arith.addi %35, %40 : vector<8x512xi32>
    %42 = vector.extract_strided_slice %0 {offsets = [0, 6], sizes = [8, 1], strides = [1, 1]} : vector<8x8xi32> to vector<8x1xi32>
    %43 = vector.broadcast %42 : vector<8x1xi32> to vector<8x512xi32>
    %44 = vector.broadcast %4 : vector<1x512xi32> to vector<8x512xi32>
    %45 = arith.cmpi eq, %43, %44 : vector<8x512xi32>
    %46 = arith.extui %45 : vector<8x512xi1> to vector<8x512xi32>
    %47 = arith.addi %41, %46 : vector<8x512xi32>
    %48 = vector.extract_strided_slice %0 {offsets = [0, 7], sizes = [8, 1], strides = [1, 1]} : vector<8x8xi32> to vector<8x1xi32>
    %49 = vector.broadcast %48 : vector<8x1xi32> to vector<8x512xi32>
    %50 = vector.broadcast %4 : vector<1x512xi32> to vector<8x512xi32>
    %51 = arith.cmpi eq, %49, %50 : vector<8x512xi32>
    %52 = arith.extui %51 : vector<8x512xi1> to vector<8x512xi32>
    %53 = arith.addi %47, %52 : vector<8x512xi32>
    %54 = arith.sitofp %53 : vector<8x512xi32> to vector<8x512xf32>
    %c0_1 = arith.constant 0 : index
    %c0_2 = arith.constant 0 : index
    %55 = vector.load %arg3[%c0_1, %c0_2] : memref<8x512xf32, #tpu.memory_space<vmem>>, vector<8x512xf32>
    tpu.vector_store %arg3[%c0_1, %c0_2], %54 {strides = array<i32>} : memref<8x512xf32, #tpu.memory_space<vmem>>, vector<8x512xf32>,
    return
  }
  func.func @transform_0(%arg0: i32, %arg1: i32) -> (i32, i32) {
    %c0_i32 = arith.constant 0 : i32
    %c0_i32_0 = arith.constant 0 : i32
    return %arg0, %c0_i32 : i32, i32
  }
  func.func @transform_1(%arg0: i32, %arg1: i32) -> (i32, i32) {
    %c0_i32 = arith.constant 0 : i32
    return %arg0, %arg1 : i32, i32
  }
}

</mosaic_0001>

<bundles_post_ra>
// kernel: tpu_custom_call.1
= control target key start
LH: loop header
LB: loop body
LE: loop exit
PB: predicated region body
PF: predicated region fallthrough
CT: control target
= control target key end

     0   :  { %6 = vsyncpa [#allocation3], 0  ;;  %s359_s0 = inlined_call_operand.hbm [shape: s32[8,8], index: 0, kind: input, shape index: {}]   ;;  %s360_s1 = inlined_call_operand.hbm [shape: f32[8,512], index: 1, kind: output, shape index: {}]  }
   0x1   :  { %7 = vsyncpa [#allocation4], 0  ;;  %s239_s6 = smov [#allocation2]   ;;  %s191_s10 = scalar_lea.hbm %s359_s0, 128 }
   0x2   :  { %s14_s7 = sshll.u32 %s239_s6, 4  ;;  %p192_p0 = scmp.ne.s32.totalorder %s359_s0, %s191_s10  ;;  %s15_s7 = int_to_ptr.vmem [resolvable:$true] %s14_s7 }
   0x3   :  { %p195_p1 = scmp.lt.u32.totalorder %s191_s10, %s359_s0 }
   0x5   :  { %p197_p2 = pnand %p195_p1, %p192_p0 }
   0x7   :  { %200 = shalt.err (!%p197_p2)
}
   0x8   :  { %s201_s15 = scalar_lea.vmem %s15_s7, 128  ;;  %p206_p4 = scmp.lt.s32.totalorder %s15_s7, %s15_s7 }
   0x9   :  { %p202_p3 = scmp.ne.s32.totalorder %s15_s7, %s201_s15  ;;  %p207_p5 = scmp.lt.s32.totalorder %s201_s15, %s201_s15 }
   0xb   :  { %p208_p6 = por %p207_p5, %p206_p4 }
   0xd   :  { %p209_p7 = pnand %p208_p6, %p202_p3 }
   0xf   :  { %212 = shalt.err (!%p209_p7)
}
  0x10   :  { %17 = dma.hbm_to_vmem [thread:$0]  %s359_s0, 128, %s15_s7, [#allocation3]  }
  0x11   :  { %235 = dma.done.wait [#allocation3], 128  }
  0x12   :  { %236 = vsyncadd [#allocation3], 4294967168  ;;  %v240_v0 = vmov 2   ;;  %v241_v1 = vmov 0   ;;  %v21_v2 = vld [vmem:[#allocation2] sm:$0xff]  ;;  %v242_v3 = vmov 3   ;;  %v23_v9 = vlaneseq }
  0x13   :  { %184 = vset.pattern.permute.xlu1 %v240_v0  ;;  %182 = vset.pattern.permute.xlu0 %v241_v1  ;;  %v243_v4 = vmov 1   ;;  %v244_v5 = vmov 4   ;;  %v245_v6 = vmov 5   ;;  %v246_v7 = vmov 6   ;;  %s248_s0 = smov [#allocation5]  }
  0x14   :  { %60 = vperm.xlu1 %184, %v21_v2   ;;  %34 = vperm.xlu0 %182, %v21_v2   ;;  %v247_v8 = vmov 7   ;;  %v272_v10 = vand.u32 127, %v23_v9  ;;  %s163_s18 = sshll.u32 %s248_s0, 4  ;;  %s164_s18 = int_to_ptr.vmem [resolvable:$true] %s163_s18 }
  0x15   :  { %s213_s19 = scalar_lea.vmem %s164_s18, 512  ;;  %p218_p9 = scmp.lt.s32.totalorder %s164_s18, %s164_s18 }
  0x16   :  { %v275_v11 = vadd.s32 128, %v272_v10  ;;  %v278_v12 = vadd.s32 256, %v272_v10  ;;  %v281_v13 = vadd.s32 384, %v272_v10  ;;  %p214_p8 = scmp.ne.s32.totalorder %s164_s18, %s213_s19  ;;  %p219_p10 = scmp.lt.s32.totalorder %s213_s19, %s213_s19 }
  0x18   :  { %185 = vset.pattern.permute.xlu1 %v242_v3  ;;  %183 = vset.pattern.permute.xlu0 %v243_v4  ;;  %p220_p11 = por %p219_p10, %p218_p9 }
  0x19   :  { %75 = vperm.xlu1 %185, %v21_v2   ;;  %45 = vperm.xlu0 %183, %v21_v2  }
  0x1a   :  { %p221_p12 = pnand %p220_p11, %p214_p8 }
  0x1d   :  { %186 = vset.pattern.permute.xlu1 %v244_v5  ;;  %187 = vset.pattern.permute.xlu0 %v245_v6 }
  0x1e   :  { %90 = vperm.xlu1 %186, %v21_v2   ;;  %105 = vperm.xlu0 %187, %v21_v2  }
  0x22   :  { %188 = vset.pattern.permute.xlu1 %v246_v7  ;;  %190 = vset.pattern.permute.xlu0 %v247_v8 }
  0x23   :  { %120 = vperm.xlu1 %188, %v21_v2  }
  0x27   :  { %189 = vset.pattern.permute.xlu1 %v247_v8 }
  0x28   :  { %135 = vperm.xlu1 %189, %v21_v2  }
  0x93   :  { %v61_v14 = vpop.permute.xlu1 %60  ;;  %v35_v15 = vpop.permute.xlu0 %34 }
  0x94   :  { %vm62_vm0 = vcmp.eq.s32.totalorder %v61_v14, %v272_v10  ;;  %vm63_vm1 = vcmp.eq.s32.totalorder %v61_v14, %v275_v11  ;;  %vm64_vm2 = vcmp.eq.s32.totalorder %v61_v14, %v278_v12  ;;  %vm65_vm3 = vcmp.eq.s32.totalorder %v61_v14, %v281_v13 }
  0x95   :  { %vm36_vm4 = vcmp.eq.s32.totalorder %v35_v15, %v272_v10  ;;  %vm37_vm5 = vcmp.eq.s32.totalorder %v35_v15, %v275_v11  ;;  %vm38_vm6 = vcmp.eq.s32.totalorder %v35_v15, %v278_v12  ;;  %vm39_vm7 = vcmp.eq.s32.totalorder %v35_v15, %v281_v13 }
  0x96   :  { %v66_v16 = vsel %vm62_vm0, 1, %v241_v1  ;;  %v67_v17 = vsel %vm63_vm1, 1, %v241_v1  ;;  %v68_v18 = vsel %vm64_vm2, 1, %v241_v1  ;;  %v69_v19 = vsel %vm65_vm3, 1, %v241_v1 }
  0x97   :  { %v40_v20 = vsel %vm36_vm4, 1, %v241_v1  ;;  %v41_v21 = vsel %vm37_vm5, 1, %v241_v1  ;;  %v42_v22 = vsel %vm38_vm6, 1, %v241_v1  ;;  %v43_v23 = vsel %vm39_vm7, 1, %v241_v1 }
  0x98   :  { %v76_v24 = vpop.permute.xlu1 %75  ;;  %v46_v25 = vpop.permute.xlu0 %45 }
  0x99   :  { %vm77_vm8 = vcmp.eq.s32.totalorder %v76_v24, %v272_v10  ;;  %vm78_vm9 = vcmp.eq.s32.totalorder %v76_v24, %v275_v11  ;;  %vm79_vm10 = vcmp.eq.s32.totalorder %v76_v24, %v278_v12  ;;  %vm80_vm11 = vcmp.eq.s32.totalorder %v76_v24, %v281_v13 }
  0x9a   :  { %v81_v26 = vsel %vm77_vm8, 1, %v241_v1  ;;  %v82_v27 = vsel %vm78_vm9, 1, %v241_v1  ;;  %v83_v28 = vsel %vm79_vm10, 1, %v241_v1  ;;  %v84_v29 = vsel %vm80_vm11, 1, %v241_v1 }
  0x9b   :  { %vm47_vm12 = vcmp.eq.s32.totalorder %v46_v25, %v272_v10  ;;  %vm48_vm13 = vcmp.eq.s32.totalorder %v46_v25, %v275_v11  ;;  %vm49_vm14 = vcmp.eq.s32.totalorder %v46_v25, %v278_v12  ;;  %vm50_vm15 = vcmp.eq.s32.totalorder %v46_v25, %v281_v13 }
  0x9c   :  { %v51_v30 = vsel %vm47_vm12, 1, %v241_v1  ;;  %v52_v31 = vsel %vm48_vm13, 1, %v241_v1  ;;  %v53_v32 = vsel %vm49_vm14, 1, %v241_v1  ;;  %v54_v33 = vsel %vm50_vm15, 1, %v241_v1 }
  0x9d   :  { %v55_v34 = vadd.s32 %v51_v30, %v40_v20  ;;  %v56_v35 = vadd.s32 %v52_v31, %v41_v21  ;;  %v57_v36 = vadd.s32 %v53_v32, %v42_v22  ;;  %v58_v37 = vadd.s32 %v54_v33, %v43_v23  ;;  %v91_v38 = vpop.permute.xlu1 %90  ;;  %v106_v43 = vpop.permute.xlu0 %105 }
  0x9e   :  { %vm92_vm0 = vcmp.eq.s32.totalorder %v91_v38, %v272_v10  ;;  %vm93_vm1 = vcmp.eq.s32.totalorder %v91_v38, %v275_v11  ;;  %vm94_vm2 = vcmp.eq.s32.totalorder %v91_v38, %v278_v12  ;;  %vm95_vm3 = vcmp.eq.s32.totalorder %v91_v38, %v281_v13 }
  0x9f   :  { %v70_v39 = vadd.s32 %v66_v16, %v55_v34  ;;  %v71_v40 = vadd.s32 %v67_v17, %v56_v35  ;;  %v72_v41 = vadd.s32 %v68_v18, %v57_v36  ;;  %v73_v42 = vadd.s32 %v69_v19, %v58_v37 }
  0xa0   :  { %v96_v44 = vsel %vm92_vm0, 1, %v241_v1  ;;  %v97_v45 = vsel %vm93_vm1, 1, %v241_v1  ;;  %v98_v46 = vsel %vm94_vm2, 1, %v241_v1  ;;  %v99_v47 = vsel %vm95_vm3, 1, %v241_v1 }
  0xa1   :  { %v85_v48 = vadd.s32 %v81_v26, %v70_v39  ;;  %v86_v49 = vadd.s32 %v82_v27, %v71_v40  ;;  %v87_v50 = vadd.s32 %v83_v28, %v72_v41  ;;  %v88_v51 = vadd.s32 %v84_v29, %v73_v42 }
  0xa2   :  { %vm107_vm4 = vcmp.eq.s32.totalorder %v106_v43, %v272_v10  ;;  %vm108_vm5 = vcmp.eq.s32.totalorder %v106_v43, %v275_v11  ;;  %vm109_vm6 = vcmp.eq.s32.totalorder %v106_v43, %v278_v12  ;;  %vm110_vm7 = vcmp.eq.s32.totalorder %v106_v43, %v281_v13  ;;  %v121_v52 = vpop.permute.xlu1 %120 }
  0xa3   :  { %v100_v53 = vadd.s32 %v96_v44, %v85_v48  ;;  %v101_v54 = vadd.s32 %v97_v45, %v86_v49  ;;  %v102_v55 = vadd.s32 %v98_v46, %v87_v50  ;;  %v103_v56 = vadd.s32 %v99_v47, %v88_v51 }
  0xa4   :  { %v111_v57 = vsel %vm107_vm4, 1, %v241_v1  ;;  %v112_v58 = vsel %vm108_vm5, 1, %v241_v1  ;;  %v113_v59 = vsel %vm109_vm6, 1, %v241_v1  ;;  %v114_v60 = vsel %vm110_vm7, 1, %v241_v1 }
  0xa5   :  { %v115_v61 = vadd.s32 %v111_v57, %v100_v53  ;;  %v116_v62 = vadd.s32 %v112_v58, %v101_v54  ;;  %v117_v63 = vadd.s32 %v113_v59, %v102_v55  ;;  %v118_v0 = vadd.s32 %v114_v60, %v103_v56 }
  0xa6   :  { %vm122_vm8 = vcmp.eq.s32.totalorder %v121_v52, %v272_v10  ;;  %vm123_vm9 = vcmp.eq.s32.totalorder %v121_v52, %v275_v11  ;;  %vm124_vm10 = vcmp.eq.s32.totalorder %v121_v52, %v278_v12  ;;  %vm125_vm11 = vcmp.eq.s32.totalorder %v121_v52, %v281_v13 }
  0xa7   :  { %v126_v2 = vsel %vm122_vm8, 1, %v241_v1  ;;  %v127_v3 = vsel %vm123_vm9, 1, %v241_v1  ;;  %v128_v4 = vsel %vm124_vm10, 1, %v241_v1  ;;  %v129_v5 = vsel %vm125_vm11, 1, %v241_v1  ;;  %v136_v6 = vpop.permute.xlu1 %135 }
  0xa8   :  { %v130_v7 = vadd.s32 %v126_v2, %v115_v61  ;;  %v131_v8 = vadd.s32 %v127_v3, %v116_v62  ;;  %v132_v9 = vadd.s32 %v128_v4, %v117_v63  ;;  %v133_v14 = vadd.s32 %v129_v5, %v118_v0 }
  0xa9   :  { %vm137_vm12 = vcmp.eq.s32.totalorder %v136_v6, %v272_v10  ;;  %vm138_vm13 = vcmp.eq.s32.totalorder %v136_v6, %v275_v11  ;;  %vm139_vm14 = vcmp.eq.s32.totalorder %v136_v6, %v278_v12  ;;  %vm140_vm15 = vcmp.eq.s32.totalorder %v136_v6, %v281_v13 }
  0xaa   :  { %v141_v15 = vsel %vm137_vm12, 1, %v241_v1  ;;  %v142_v16 = vsel %vm138_vm13, 1, %v241_v1  ;;  %v143_v17 = vsel %vm139_vm14, 1, %v241_v1  ;;  %v144_v18 = vsel %vm140_vm15, 1, %v241_v1 }
  0xab   :  { %v145_v19 = vadd.s32 %v141_v15, %v130_v7  ;;  %v146_v20 = vadd.s32 %v142_v16, %v131_v8  ;;  %v147_v21 = vadd.s32 %v143_v17, %v132_v9  ;;  %v148_v10 = vadd.s32 %v144_v18, %v133_v14 }
  0xad   :  { %v149_v22 = vcvt.s32.f32 %v145_v19  ;;  %v150_v11 = vcvt.s32.f32 %v146_v20  ;;  %v151_v23 = vcvt.s32.f32 %v147_v21  ;;  %v152_v12 = vcvt.s32.f32 %v148_v10 }
  0xaf   :  { %153 = vst [vmem:[#allocation5] sm:$0xff] %v149_v22  ;;  %154 = vst [vmem:[#allocation5 + $0x8] sm:$0xff] %v150_v11 }
  0xb0   :  { %155 = vst [vmem:[#allocation5 + $0x10] sm:$0xff] %v151_v23  ;;  %156 = vst [vmem:[#allocation5 + $0x18] sm:$0xff] %v152_v12 }
  0xb1   :  { %224 = shalt.err (!%p221_p12)
}
  0xb2   :  { %s225_s22 = scalar_lea.hbm %s360_s1, 512 }
  0xb3   :  { %p226_p13 = scmp.ne.s32.totalorder %s360_s1, %s225_s22  ;;  %p229_p0 = scmp.lt.u32.totalorder %s225_s22, %s360_s1 }
  0xb5   :  { %p231_p1 = pnand %p229_p0, %p226_p13 }
  0xb7   :  { %234 = shalt.err (!%p231_p1)
}
  0xb8   :  { %166 = dma.vmem_to_hbm [thread:$0]  %s164_s18, 512, %s360_s1, [#allocation4]  }
  0xb9   :  { %237 = dma.done.wait [#allocation4], 512  }
  0xba   :  { %238 = vsyncadd [#allocation4], 4294966784 }
  0xbb   :  { %170 = vsyncpa [#allocation3], 1 }
  0xbc   :  { %171 = vsyncpa [#allocation4], 1 }

</bundles_post_ra>
